<compile_context>
chip_gen: v7x
topology: tpu7x:2x2x1
jax: 0.10.0
libtpu: 0.0.40
codegen_flags: <defaults>
</compile_context>

<pallas_src>
import math
import functools

import jax
import jax.numpy as jnp
from jax.experimental import pallas as pl
from jax.experimental.pallas import tpu as pltpu


def _cdiv(a, b):
    return -(-a // b)


def _round_up(x, m):
    return _cdiv(x, m) * m


# Per-buffer budget for keeping the x stripe resident (it is double-buffered).
_X_STRIPE_BUDGET_BYTES = 12 << 20
# Smallest default scoped-VMEM limit across generations (v5e: 16 MiB); above
# this we pass an explicit vmem_limit_bytes.
_DEFAULT_SCOPED_VMEM = 14 << 20


def _erf(x):
    # Abramowitz & Stegun 7.1.26 rational approximation of erf.  Runs once per
    # output tile in the epilogue; the divide goes to the EUP (exact recip so
    # GELU parity with torch's exact-erf is not limited by an approx vrcp).
    # TODO(synk): switch to lax.erf if/when its Mosaic lowering is guaranteed.
    a1, a2, a3, a4, a5 = 0.254829592, -0.284496736, 1.421413741, -1.453152027, 1.061405429
    p = 0.3275911
    s = jnp.sign(x)
    z = jnp.abs(x)
    t = pl.reciprocal(1.0 + p * z, approx=False)
    poly = ((((a5 * t + a4) * t + a3) * t + a2) * t + a1) * t
    return s * (1.0 - poly * jnp.exp(-z * z))


def _linear_kernel(x_ref, w_ref, o_ref, acc_ref, *, scale, act, tk):
    k = pl.program_id(2)

    @pl.when(k == 0)
    def _():
        acc_ref[...] = jnp.zeros_like(acc_ref)

    # x is either the (tm, tk) K-tile streamed with the grid, or a resident
    # (tm, Kp) stripe that stays in VMEM across the whole (j, k) sweep; in the
    # latter case slice the K chunk out of VMEM (no extra DMA).
    if x_ref.shape[1] == tk:
        x_chunk = x_ref[...]
    else:
        x_chunk = x_ref[:, pl.ds(pl.multiple_of(k * tk, tk), tk)]

    # Weight arrives pre-transposed as (tk, tn): native-dtype operands into
    # the MXU with a lane-dense (N-major) RHS -> no in-kernel XLU transpose
    # competing with the vmatmul push slots; fp32 accumulation.
    acc_ref[...] += jnp.dot(x_chunk, w_ref[...],
                            preferred_element_type=jnp.float32)

    @pl.when(k == pl.num_programs(2) - 1)
    def _():
        y = acc_ref[...]
        if scale is not None:                 # 1/sqrt(dim_in) folded here
            y = y * scale
        if act == "gelu":                     # torch.nn.GELU(): exact erf form
            y = 0.5 * y * (1.0 + _erf(y * (1.0 / math.sqrt(2.0))))
        elif act == "silu":                   # torch.nn.SiLU(): x * sigmoid(x)
            y = y * jax.nn.sigmoid(y)
        o_ref[...] = y.astype(o_ref.dtype)


def _fit_tile(dim, tile_default, align):
    """Largest aligned tile <= default that minimizes padding waste for dim."""
    if _round_up(dim, align) <= tile_default:
        return _round_up(dim, align)
    nblk = _cdiv(dim, tile_default)
    return _round_up(_cdiv(dim, nblk), align)


def _ensure_two_parallel_blocks(tm, tn, M, N):
    """v7x megacore: keep >= 2 (i, j) blocks so both TensorCores get work."""
    def nblk(dim, t):
        return _cdiv(_round_up(dim, t), t)
    for _ in range(8):
        if nblk(M, tm) * nblk(N, tn) >= 2:
            break
        if tn > 128:
            tn = _round_up(tn // 2, 128)
        elif tm > 16:
            tm = _round_up(tm // 2, 16)
        else:
            break
    return tm, tn


def linear_pallas(x, weight, *, act_fn_type="", scale_before=True,
                  tm=512, tn=1024, tk=512, vmem_limit_bytes=None):
    """y = act((x / sqrt(dim_in) if scale_before else x) @ weight.T)."""
    batch, seq, dim_in = x.shape
    dim_out, dim_in_w = weight.shape
    assert dim_in_w == dim_in

    M, K, N = batch * seq, dim_in, dim_out
    itemsize = jnp.dtype(x.dtype).itemsize

    # Tile fitting: multiples of 128 on lane dims (matches 4x128^2 / 2x256^2
    # MXUs), 16 on the bf16 sublane dim; minimal-padding fit for ragged dims.
    tm = _fit_tile(M, tm, 16)
    tn = _fit_tile(N, tn, 128)
    tk = _fit_tile(K, tk, 128)
    tm, tn = _ensure_two_parallel_blocks(tm, tn, M, N)

    Mp, Np, Kp = _round_up(M, tm), _round_up(N, tn), _round_up(K, tk)

    # K MUST stay zero-padded (a garbage K tail would accumulate into valid
    # outputs); M/N padding is minimized by the tile fitting above.
    x2 = x.reshape(M, K)
    if (Mp, Kp) != (M, K):
        x2 = jnp.pad(x2, ((0, Mp - M), (0, Kp - K)))
    # Pre-transpose the weight once to (K, N) outside the kernel.
    # TODO(synk): cache the padded/transposed weight across calls (inference).
    wt = weight.T
    if (Kp, Np) != (K, N):
        wt = jnp.pad(wt, ((0, Kp - K), (0, Np - N)))

    # Keep the x row-stripe resident across the j (N) axis when it fits:
    # removes the (N/tn)x HBM re-read of activations entirely.
    n_j = Np // tn
    x_resident = (n_j > 1) and (2 * tm * Kp * itemsize <= _X_STRIPE_BUDGET_BYTES)
    if x_resident:
        x_spec = pl.BlockSpec((tm, Kp), lambda i, j, k: (i, 0))
        x_block_k = Kp
    else:
        x_spec = pl.BlockSpec((tm, tk), lambda i, j, k: (i, k))
        x_block_k = tk

    act = act_fn_type.lower()
    kernel = functools.partial(
        _linear_kernel,
        scale=(1.0 / math.sqrt(dim_in)) if scale_before else None,
        act=act, tk=tk)

    # Advisory cost: report actual HBM traffic including operand re-reads.
    x_bytes = (Mp * Kp if x_resident else n_j * Mp * Kp) * itemsize
    w_bytes = (Mp // tm) * Kp * Np * itemsize
    o_bytes = Mp * Np * itemsize
    cost = pl.CostEstimate(
        flops=2 * Mp * Np * Kp,
        bytes_accessed=x_bytes + w_bytes + o_bytes,
        transcendentals=(Mp * Np if act in ("gelu", "silu") else 0))

    # VMEM footprint: double-buffered inputs/outputs + fp32 accumulator.
    vmem_est = (2 * (tm * x_block_k + tk * tn + tm * tn) * itemsize
                + tm * tn * 4)
    cp_kwargs = dict(dimension_semantics=("parallel", "parallel", "arbitrary"))
    if vmem_limit_bytes is None and vmem_est > _DEFAULT_SCOPED_VMEM:
        # Cap at 64 MiB: v7x per-TC physical VMEM (v5e/v6e have 128 MiB).
        vmem_limit_bytes = min(64 << 20, (vmem_est * 3) // 2)
    if vmem_limit_bytes is not None:
        cp_kwargs["vmem_limit_bytes"] = int(vmem_limit_bytes)

    out = pl.pallas_call(
        kernel,
        out_shape=jax.ShapeDtypeStruct((Mp, Np), x.dtype),
        grid_spec=pltpu.PrefetchScalarGridSpec(
            num_scalar_prefetch=0,
            grid=(Mp // tm, Np // tn, Kp // tk),
            in_specs=[x_spec,
                      pl.BlockSpec((tk, tn), lambda i, j, k: (k, j))],
            out_specs=pl.BlockSpec((tm, tn), lambda i, j, k: (i, j)),
            scratch_shapes=[pltpu.VMEM((tm, tn), jnp.float32)]),
        compiler_params=pltpu.CompilerParams(**cp_kwargs),
        cost_estimate=cost,
    )(x2, wt)

    if (Mp, Np) != (M, N):
        out = out[:M, :N]
    return out.reshape(batch, seq, N)


def _reference(x, weight, *, act_fn_type="", scale_before=True):
    xf = x.astype(jnp.float32)
    wf = weight.astype(jnp.float32)
    if scale_before:
        xf = xf / math.sqrt(x.shape[-1])
    y = xf @ wf.T
    if act_fn_type.lower() == "gelu":
        y = jax.nn.gelu(y, approximate=False)
    elif act_fn_type.lower() == "silu":
        y = y * jax.nn.sigmoid(y)
    return y.astype(x.dtype)


def _check(x, weight, act, scale_before):
    y = linear_pallas(x, weight, act_fn_type=act, scale_before=scale_before)
    jax.block_until_ready(y)
    assert y.shape == x.shape[:2] + (weight.shape[0],) and y.dtype == x.dtype
    y_ref = _reference(x, weight, act_fn_type=act, scale_before=scale_before)
    rel = jnp.max(jnp.abs(y.astype(jnp.float32) - y_ref.astype(jnp.float32))
                  / (1.0 + jnp.abs(y_ref.astype(jnp.float32))))
    return bool(rel < 2e-2)


if __name__ == "__main__":
    # torch.half (fp16) is mapped to bfloat16: the native TPU MXU 16-bit dtype;
    # accumulation is fp32 in both cases.
    dtype = jnp.bfloat16
    key = jax.random.PRNGKey(0)
    kx, kw, kx2, kw2 = jax.random.split(key, 4)

    ok = True

    # Aligned shapes.
    batch, seq, dim_in, dim_out = 2, 64, 256, 128
    x = jax.random.normal(kx, (batch, seq, dim_in), dtype=jnp.float32).astype(dtype)
    # torch.nn.init.normal_(self.weight, mean=0.0, std=1.0)
    weight = jax.random.normal(kw, (dim_out, dim_in), dtype=jnp.float32).astype(dtype)
    for act, scale_before in (("", True), ("gelu", True), ("silu", False)):
        ok &= _check(x, weight, act, scale_before)

    # Ragged shapes (exercise the minimal-padding tile-fit path).
    b2, s2, di2, do2 = 2, 10, 200, 72
    x_r = jax.random.normal(kx2, (b2, s2, di2), dtype=jnp.float32).astype(dtype)
    w_r = jax.random.normal(kw2, (do2, di2), dtype=jnp.float32).astype(dtype)
    ok &= _check(x_r, w_r, "gelu", True)
    ok &= _check(x_r, w_r, "silu", False)

    if ok:
        print("KERNEL_OK")
</pallas_src>

<mosaic_0001>
module attributes {stable_mosaic.version = 11 : i64} {
  func.func @_linear_kernel(%arg0: i32, %arg1: i32, %arg2: i32, %arg3: memref<64x256xbf16, #tpu.memory_space<vmem>>, %arg4: memref<256x128xbf16, #tpu.memory_space<vmem>>, %arg5: memref<64x128xbf16, #tpu.memory_space<vmem>>, %arg6: memref<64x128xf32, #tpu.memory_space<vmem>>) attributes {dimension_semantics = [#tpu.dimension_semantics<parallel>, #tpu.dimension_semantics<parallel>, #tpu.dimension_semantics<arbitrary>], iteration_bounds = array<i64: 2, 1, 1>, scalar_prefetch = 0 : i64, scratch_operands = 1 : i64, tpu.core_type = #tpu.core_type<tc>, window_params = [{transform_indices = @transform_0, window_bounds = array<i64: 64, 256>}, {transform_indices = @transform_1, window_bounds = array<i64: 256, 128>}, {transform_indices = @transform_2, window_bounds = array<i64: 64, 128>}]} {
    %c0_i32 = arith.constant 0 : i32
    %0 = arith.cmpi eq, %arg2, %c0_i32 : i32
    %1 = arith.extui %0 : i1 to i32
    %c0_i32_0 = arith.constant 0 : i32
    %2 = arith.cmpi ne, %1, %c0_i32_0 : i32
    scf.if %2 {
      %cst_10 = arith.constant 0.000000e+00 : f32
      %12 = vector.broadcast %cst_10 : f32 to vector<64x128xf32>
      %c0_11 = arith.constant 0 : index
      %c0_12 = arith.constant 0 : index
      %13 = vector.load %arg6[%c0_11, %c0_12] : memref<64x128xf32, #tpu.memory_space<vmem>>, vector<64x128xf32>
      tpu.vector_store %arg6[%c0_11, %c0_12], %12 {strides = array<i32>} : memref<64x128xf32, #tpu.memory_space<vmem>>, vector<64x128xf32>,
    } else {
    }
    %c0 = arith.constant 0 : index
    %c0_1 = arith.constant 0 : index
    %3 = vector.load %arg3[%c0, %c0_1] : memref<64x256xbf16, #tpu.memory_space<vmem>>, vector<64x256xbf16>
    %c0_2 = arith.constant 0 : index
    %c0_3 = arith.constant 0 : index
    %4 = vector.load %arg6[%c0_2, %c0_3] : memref<64x128xf32, #tpu.memory_space<vmem>>, vector<64x128xf32>
    %c0_4 = arith.constant 0 : index
    %c0_5 = arith.constant 0 : index
    %5 = vector.load %arg4[%c0_4, %c0_5] : memref<256x128xbf16, #tpu.memory_space<vmem>>, vector<256x128xbf16>
    %cst = arith.constant dense<0.000000e+00> : vector<64x128xf32>
    %6 = tpu.matmul %3, %5, %cst {dimension_numbers = #tpu.dot_dimension_numbers<[1], [0], [0], [1], [0, 0, 1, 1], [], []>} : vector<64x256xbf16>, vector<256x128xbf16>, vector<64x128xf32> -> vector<64x128xf32>
    %7 = arith.addf %4, %6 : vector<64x128xf32>
    %c0_6 = arith.constant 0 : index
    %c0_7 = arith.constant 0 : index
    %8 = vector.load %arg6[%c0_6, %c0_7] : memref<64x128xf32, #tpu.memory_space<vmem>>, vector<64x128xf32>
    tpu.vector_store %arg6[%c0_6, %c0_7], %7 {strides = array<i32>} : memref<64x128xf32, #tpu.memory_space<vmem>>, vector<64x128xf32>,
    %c0_i32_8 = arith.constant 0 : i32
    %9 = arith.cmpi eq, %arg2, %c0_i32_8 : i32
    %10 = arith.extui %9 : i1 to i32
    %c0_i32_9 = arith.constant 0 : i32
    %11 = arith.cmpi ne, %10, %c0_i32_9 : i32
    scf.if %11 {
      %c0_10 = arith.constant 0 : index
      %c0_11 = arith.constant 0 : index
      %12 = vector.load %arg6[%c0_10, %c0_11] : memref<64x128xf32, #tpu.memory_space<vmem>>, vector<64x128xf32>
      %cst_12 = arith.constant 6.250000e-02 : f32
      %13 = vector.broadcast %cst_12 : f32 to vector<64x128xf32>
      %14 = arith.mulf %12, %13 : vector<64x128xf32>
      %15 = arith.truncf %14 : vector<64x128xf32> to vector<64x128xbf16>
      %c0_13 = arith.constant 0 : index
      %c0_14 = arith.constant 0 : index
      %16 = vector.load %arg5[%c0_13, %c0_14] : memref<64x128xbf16, #tpu.memory_space<vmem>>, vector<64x128xbf16>
      tpu.vector_store %arg5[%c0_13, %c0_14], %15 {strides = array<i32>} : memref<64x128xbf16, #tpu.memory_space<vmem>>, vector<64x128xbf16>,
    } else {
    }
    return
  }
  func.func @transform_0(%arg0: i32, %arg1: i32, %arg2: i32) -> (i32, i32) {
    %c0_i32 = arith.constant 0 : i32
    return %arg0, %arg2 : i32, i32
  }
  func.func @transform_1(%arg0: i32, %arg1: i32, %arg2: i32) -> (i32, i32) {
    %c0_i32 = arith.constant 0 : i32
    return %arg2, %arg1 : i32, i32
  }
  func.func @transform_2(%arg0: i32, %arg1: i32, %arg2: i32) -> (i32, i32) {
    %c0_i32 = arith.constant 0 : i32
    return %arg0, %arg1 : i32, i32
  }
}

</mosaic_0001>

<bundles_post_ra>
// kernel: tpu_custom_call.1
= control target key start
LH: loop header
LB: loop body
LE: loop exit
PB: predicated region body
PF: predicated region fallthrough
CT: control target
= control target key end

     0   :  { %7 = vsyncpa [#allocation4], 0  ;;  %s1320_s0 = inlined_call_operand.hbm [shape: bf16[128,256], index: 0, kind: input, shape index: {}]   ;;  %s1321_s1 = inlined_call_operand.hbm [shape: bf16[256,128], index: 1, kind: input, shape index: {}]   ;;  %s1322_s2 = inlined_call_operand.hbm [shape: bf16[128,128], index: 2, kind: output, shape index: {}]  }
   0x1   :  { %9 = vsyncpa [#allocation4 + $0x1], 0 }
   0x2   :  { %10 = vsyncpa [#allocation7], 0 }
   0x3   :  { %11 = vsyncpa [#allocation5], 0 }
   0x4   :  { %13 = vsyncpa [#allocation5 + $0x1], 0  ;;  %s1090_s9 = smov 0   ;;  %s1092_s10 = smov 0  }
   0x5   :  { %s1094_s11 = smov 0   ;;  %s1096_s12 = smov 0  }
   0x6   :  { %s1098_s13 = smov 0   ;;  %s1100_s14 = smov 0  }
   0x7 LB: > { %s673_s15 = sadd.s32 4294967295, %s1064_s14   ;;  %s674_s16 = sadd.s32 4294967294, %s1064_s14   ;;  %s1064_s14 = sphi %s1100_s14, %s19_s14   ;;  %s1060_s13 = sphi %s1098_s13, %s1346_s13   ;;  %s1056_s12 = sphi %s1096_s12, %s1345_s12   ;;  %s1052_s11 = sphi %s1094_s11, %s1344_s11   ;;  %s1048_s10 = sphi %s1092_s10, %s1343_s10   ;;  %s1044_s9 = sphi %s1090_s9, %s1342_s9  }
   0x8   : > { %p60_p0 = scmp.ne.s32.totalorder %s1048_s10, %s1044_s9  ;;  %p1124_p1 = scmp.eq.s32.totalorder %s673_s15, 0 }
   0x9   : > { %p1128_p2 = scmp.eq.s32.totalorder %s673_s15, 1  ;;  %p120_p3 = scmp.eq.s32.totalorder %s674_s16, 1 }
   0xa   : > { %s1327_s17 = scalar_select %p1124_p1, 1, 0 }
   0xb   : > { %s1328_s18 = scalar_select %p1128_p2, 1, 0 }
   0xc   : > { %p1134_p4 = por %p1124_p1, %p60_p0  ;;  %p675_p5 = scmp.ge.s32.totalorder %s1064_s14, 1 }
   0xd   : > { %p1139_p6 = por %p120_p3, %p60_p0  ;;  %p127_p7 = scmp.lt.s32.totalorder %s1064_s14, 3 }
   0xe   : > { %s1329_s19 = scalar_select %p1134_p4, 1, 0 }
   0xf   : > { %s1330_s20 = scalar_select %p1139_p6, 1, 0 }
  0x10   : > { %p1144_p8 = pnand %p675_p5, %p127_p7  ;;  %s1066_s22 = smov [#allocation6]  }
  0x11   : > { %s143_s23 = sshll.u32 %s1066_s22, 4  ;;  %s38_s25 = sadd.s32 1, %s1060_s13  ;;  %s144_s23 = int_to_ptr.vmem [resolvable:$true] %s143_s23 }
  0x12   : > { %s1331_s21 = scalar_select %p1144_p8, 1, 0 }
  0x13   : > { %p821_p9 = pneg %p1144_p8  ;;  %s920_s28 = scalar_lea.hbm %s1321_s1, 2048 }
  0x14   : > { %p921_p12 = scmp.ne.s32.totalorder %s1321_s1, %s920_s28  ;;  %p927_p5 = scmp.lt.u32.totalorder %s920_s28, %s1321_s1 }
  0x15   : > { %p1153_p11 = pnand %p821_p9, %p1124_p1 }
  0x17   : > { %p922_p13 = pneg %p1153_p11 }
  0x19   : > { %p923_p0 = pnand %p922_p13, %p921_p12 }
  0x1b   : > { %p924_p3 = pneg %p923_p0 }
  0x1d   : > { %p929_p7 = pnand %p927_p5, %p924_p3 }
  0x1f   : > { %932 = shalt.err (!%p929_p7)
}
  0x20   : > { %s933_s5 = scalar_lea.vmem %s144_s23, 2048  ;;  %p941_p1 = scmp.lt.s32.totalorder %s144_s23, %s144_s23 }
  0x21   : > { %p934_p9 = scmp.ne.s32.totalorder %s144_s23, %s933_s5  ;;  %p942_p4 = scmp.lt.s32.totalorder %s933_s5, %s933_s5 }
  0x23   : > { %p936_p10 = pnand %p934_p9, %p922_p13  ;;  %p943_p8 = por %p942_p4, %p941_p1 }
  0x25   : > { %p937_p6 = pneg %p936_p10 }
  0x27   : > { %p944_p2 = pnand %p943_p8, %p937_p6 }
  0x29   : > { %947 = shalt.err (!%p944_p2)
}
  0x2a   : > { %s1067_s6 = smov 64   ;;  %s1068_s7 = smov 4  }
  0x2b   : > { %824 = dma.hbm_to_vmem [thread:$0]  (!%p1153_p11), %s1321_s1, 2048, %s144_s23, [#allocation7], %s1067_s6, %s1067_s6, %s1068_s7  }
  0x2c   : > { %p40_p1 = scmp.ge.s32.totalorder %s38_s25, 2  ;;  %s47_s16 = sadd.s32 1, %s1052_s11 }
  0x2d   : > { %p54_p2 = scmp.ne.s32.totalorder %s1052_s11, %s1048_s10  ;;  %p55_p4 = scmp.eq.s32.totalorder %s1064_s14, 0 }
  0x2e   : > { %s1348_s25 = smov (%p40_p1, %s38_s25), 0  ;;  %p1334_p8 = scmp.ne.s32.totalorder %s1328_s18, 0 }
  0x2f   : > { %p1180_p6 = por %p55_p4, %p54_p2  ;;  %s42_s24 = ssub.s32 %s1060_s13, %s1348_s25 }
  0x30   : > { %p1186_p10 = por %p1334_p8, %p54_p2  ;;  %p834_p12 = scmp.lt.s32.totalorder %s1064_s14, 2 }
  0x31   : > { %p45_p11 = scmp.eq.s32.totalorder %s42_s24, 0  ;;  %s157_s23 = sand.u32 1, %s1052_s11  }
  0x32   : > { %s678_s27 = sshll.u32 %s157_s23, 6  ;;  %s724_s29 = sshll.u32 %s1060_s13, 10 }
  0x33   : > { %s1195_s28 = scalar_select %p45_p11, %s1052_s11, %s47_s16  }
  0x34   : > { %s1201_s4 = scalar_lea.hbm %s1320_s0, %s724_s29  ;;  %s161_s18 = scalar_lea.vmem [#allocation3], %s678_s27 }
  0x35   : > { %s171_s5 = sshll.u32 %s161_s18, 4  ;;  %p1207_p13 = pnand %p834_p12, %p1180_p6  ;;  %s1203_s5 = int_to_ptr.vmem [resolvable:$true] %s171_s5 }
  0x36   : > { %s1211_s7 = scalar_lea.sflag [#allocation4], %s157_s23  ;;  %s948_s8 = scalar_lea.hbm %s1201_s4, 1024 }
  0x37   : > { %p949_p0 = scmp.ne.s32.totalorder %s1201_s4, %s948_s8  ;;  %p950_p3 = pneg %p1207_p13 }
  0x38   : > { %s953_s22 = scalar_lea.hbm %s1320_s0, 2048  ;;  %p954_p9 = scmp.lt.u32.totalorder %s1201_s4, %s1320_s0 }
  0x39   : > { %p951_p5 = pnand %p950_p3, %p949_p0  ;;  %p955_p1 = scmp.lt.u32.totalorder %s953_s22, %s948_s8 }
  0x3a   : > { %p957_p4 = scmp.lt.u32.totalorder %s948_s8, %s1201_s4 }
  0x3b   : > { %p952_p7 = pneg %p951_p5  ;;  %p956_p2 = por %p955_p1, %p954_p9 }
  0x3d   : > { %p958_p6 = por %p957_p4, %p956_p2 }
  0x3f   : > { %p959_p8 = pnand %p958_p6, %p952_p7 }
  0x41   : > { %962 = shalt.err (!%p959_p8)
}
  0x42   : > { %s963_s23 = scalar_lea.vmem %s1203_s5, 1024  ;;  %s1069_s29 = smov [#allocation3]  }
  0x43   : > { %p964_p12 = scmp.ne.s32.totalorder %s1203_s5, %s963_s23  ;;  %s968_s30 = sshll.u32 %s1069_s29, 4  ;;  %s969_s30 = int_to_ptr.vmem [resolvable:$false] %s968_s30 }
  0x44   : > { %s970_s3 = scalar_lea.vmem %s969_s30, 2048  ;;  %p971_p5 = scmp.lt.s32.totalorder %s1203_s5, %s969_s30 }
  0x45   : > { %p966_p11 = pnand %p964_p12, %p950_p3  ;;  %p972_p9 = scmp.lt.s32.totalorder %s970_s3, %s963_s23 }
  0x47   : > { %p967_p0 = pneg %p966_p11  ;;  %p973_p1 = por %p972_p9, %p971_p5 }
  0x49   : > { %p974_p2 = pnand %p973_p1, %p967_p0 }
  0x4b   : > { %977 = shalt.err (!%p974_p2)
}
  0x4c   : > { %s1070_s18 = smov 128   ;;  %s1071_s8 = smov 8  }
  0x4d   : > { %828 = dma.hbm_to_vmem [thread:$0]  (!%p1207_p13), %s1201_s4, 1024, %s1203_s5, %s1211_s7, %s1070_s18, %s1070_s18, %s1071_s8  }
  0x4e   : > { %p1337_p3 = scmp.ne.s32.totalorder %s1331_s21, 0 }
  0x4f   : > { %s1242_s15 = sand.u32 (!%p1337_p3), 1, %s1048_s10   ;;  %p1338_p7 = scmp.ne.s32.totalorder (!%p1337_p3), %s1329_s19, 0 }
  0x50   : > { %183 = sbr.rel (%p1337_p3) target bundleno = 368 (0x170), region = 28  ;;  %s683_s16 = sshll.u32 (!%p1337_p3), %s1242_s15, 6 }
  0x51   : > { %s186_s22 = scalar_lea.sflag (!%p1337_p3), [#allocation4], %s1242_s15  ;;  %s1246_s24 = scalar_lea.vmem (!%p1337_p3), [#allocation3], %s683_s16 }
  0x57   : > { %1031 = dma.done.wait (%p1338_p7), %s186_s22, 1024  }
  0x58   : > { %1033 = vsyncadd (%p1338_p7), %s186_s22, 4294966272  ;;  %p1339_p13 = scmp.ne.s32.totalorder %s1327_s17, 0 }
  0x5a   : > { %1035 = dma.done.wait (%p1339_p13), [#allocation7], 2048  }
  0x5b   : > { %1037 = vsyncadd (%p1339_p13), [#allocation7], 4294965248  ;;  %v892_v0 = vld [vmem:[#allocation6 + $0x40] sm:$0xff]   ;;  %v894_v2 = vld [vmem:[#allocation6 + $0x48] sm:$0xff]   ;;  %s685_s17 = sshll.u32 %s1242_s15, 5  ;;  %s733_s4 = sshll.u32 %s1056_s12, 9 }
  0x5c   : > { %v893_v1 = vld [vmem:[#allocation6] sm:$0xff]   ;;  %757 = vmatprep.subr.bf16.mxu0 %v892_v0  ;;  %797 = vmatprep.subr.bf16.mxu1 %v892_v0  ;;  %v895_v3 = vld [vmem:[#allocation6 + $0x8] sm:$0xff]   ;;  %v896_v4 = vld [vmem:[#allocation6 + $0x50] sm:$0xff]   ;;  %s213_s19 = scalar_lea.vmem [#allocation8], %s685_s17  ;;  %s1271_s7 = scalar_lea.hbm %s1322_s2, %s733_s4 }
  0x5d   : > { %758 = vmatpush3.bf16.msra.mxu0 %v893_v1  ;;  %805 = vmatpush3.bf16.msra.mxu1 %v893_v1  ;;  %v897_v5 = vld [vmem:[#allocation6 + $0x10] sm:$0xff]   ;;  %v898_v6 = vld [vmem:[#allocation6 + $0x58] sm:$0xff]   ;;  %v900_v8 = vld [vmem:[#allocation6 + $0x60] sm:$0xff]   ;;  %s570_s21 = sshll.u32 %s213_s19, 4  ;;  %s556_s27 = scalar_lea.sflag [#allocation5], %s1242_s15  ;;  %s1266_s21 = int_to_ptr.vmem [resolvable:$true] %s570_s21 }
  0x5e   : > { %759 = vmatprep.subr.bf16.mxu0 %v894_v2  ;;  %798 = vmatprep.subr.bf16.mxu1 %v894_v2  ;;  %v899_v7 = vld [vmem:[#allocation6 + $0x18] sm:$0xff]   ;;  %v901_v9 = vld [vmem:[#allocation6 + $0x20] sm:$0xff]   ;;  %v902_v10 = vld [vmem:[#allocation6 + $0x68] sm:$0xff]   ;;  %s978_s12 = scalar_lea.vmem %s1266_s21, 512  ;;  %s1072_s23 = smov [#allocation8]  }
  0x5f   : > { %v910_v11 = vld [vmem:[%s1246_s24 + $0x4] ss:$8 sps:$4 sm:$0xff]   ;;  %v904_v14 = vld [vmem:[#allocation6 + $0x70] sm:$0xff]   ;;  %v906_v16 = vld [vmem:[#allocation6 + $0x78] sm:$0xff]   ;;  %p979_p4 = scmp.ne.s32.totalorder %s1266_s21, %s978_s12  ;;  %s982_s29 = sshll.u32 %s1072_s23, 4  ;;  %s983_s29 = int_to_ptr.vmem [resolvable:$false] %s982_s29 }
  0x60   : > { %v913_v12 = vld [vmem:[%s1246_s24 + $0x24] ss:$8 sps:$4 sm:$0xff]   ;;  %447 = vmatprep.mubr.bf16.mxu0 %v910_v11  ;;  %v905_v15 = vld [vmem:[#allocation6 + $0x30] sm:$0xff]   ;;  %v907_v17 = vld [vmem:[#allocation6 + $0x38] sm:$0xff]   ;;  %s984_s30 = scalar_lea.vmem %s983_s29, 1024  ;;  %p985_p12 = scmp.lt.s32.totalorder %s1266_s21, %s983_s29 }
  0x61   : > { %760 = vmatpush3.bf16.msra.mxu0 %v895_v3  ;;  %806 = vmatpush3.bf16.msra.mxu1 %v895_v3  ;;  %v903_v13 = vld [vmem:[#allocation6 + $0x28] sm:$0xff]   ;;  %v914_v20 = vld [vmem:[%s1246_s24 + $0x14] ss:$8 sps:$4 sm:$0xff]   ;;  %v918_v22 = vld [vmem:[%s1246_s24 + $0x10] ss:$8 sps:$4 sm:$0xff]   ;;  %p980_p6 = pnand %p979_p4, %p1186_p10  ;;  %p986_p11 = scmp.lt.s32.totalorder %s984_s30, %s978_s12 }
  0x62   : > { %761 = vmatprep.subr.bf16.mxu0 %v896_v4  ;;  %799 = vmatprep.subr.bf16.mxu1 %v896_v4  ;;  %v908_v18 = vld [vmem:[%s1246_s24] ss:$8 sps:$4 sm:$0xff]   ;;  %v916_v21 = vld [vmem:[%s1246_s24 + $0x34] ss:$8 sps:$4 sm:$0xff]   ;;  %v919_v23 = vld [vmem:[%s1246_s24 + $0x30] ss:$8 sps:$4 sm:$0xff]  }
  0x63   : > { %463 = vmatprep.mubr.bf16.mxu1 %v913_v12  ;;  %v911_v19 = vld [vmem:[%s1246_s24 + $0x20] ss:$8 sps:$4 sm:$0xff]   ;;  %p981_p8 = pneg %p980_p6  ;;  %p987_p0 = por %p986_p11, %p985_p12 }
  0x65   : > { %762 = vmatpush3.bf16.msra.mxu0 %v897_v5  ;;  %807 = vmatpush3.bf16.msra.mxu1 %v897_v5  ;;  %p988_p5 = pnand %p987_p0, %p981_p8 }
  0x66   : > { %763 = vmatprep.subr.bf16.mxu0 %v898_v6  ;;  %800 = vmatprep.subr.bf16.mxu1 %v898_v6 }
  0x69   : > { %764 = vmatpush3.bf16.msra.mxu0 %v899_v7  ;;  %808 = vmatpush3.bf16.msra.mxu1 %v899_v7 }
  0x6a   : > { %765 = vmatprep.subr.bf16.mxu0 %v900_v8  ;;  %801 = vmatprep.subr.bf16.mxu1 %v900_v8 }
  0x6d   : > { %766 = vmatpush3.bf16.msra.mxu0 %v901_v9  ;;  %809 = vmatpush3.bf16.msra.mxu1 %v901_v9 }
  0x6e   : > { %767 = vmatprep.subr.bf16.mxu0 %v902_v10  ;;  %802 = vmatprep.subr.bf16.mxu1 %v902_v10 }
  0x71   : > { %768 = vmatpush3.bf16.msra.mxu0 %v903_v13  ;;  %810 = vmatpush3.bf16.msra.mxu1 %v903_v13 }
  0x72   : > { %769 = vmatprep.subr.bf16.mxu0 %v904_v14  ;;  %803 = vmatprep.subr.bf16.mxu1 %v904_v14 }
  0x75   : > { %770 = vmatpush3.bf16.msra.mxu0 %v905_v15  ;;  %811 = vmatpush3.bf16.msra.mxu1 %v905_v15 }
  0x76   : > { %771 = vmatprep.subr.bf16.mxu0 %v906_v16  ;;  %804 = vmatprep.subr.bf16.mxu1 %v906_v16 }
  0x79   : > { %772 = vmatpush3.bf16.msra.mxu0 %v907_v17  ;;  %812 = vmatpush3.bf16.msra.mxu1 %v907_v17 }
  0x7c   : > { %448 = vmatmul.mubr.bf16.vlgmr.msra.gmra.mrb[0].mxu0 %v908_v18  ;;  %464 = vmatmul.mubr.bf16.vlgmr.msra.gmra.mrb[0].mxu1 %v911_v19 }
  0x7d   : > { %455 = vmatprep.mubr.bf16.mxu0 %v914_v20  ;;  %471 = vmatprep.mubr.bf16.mxu1 %v916_v21 }
  0x84   : > { %456 = vmatmul.mubr.bf16.gmra.mrb[4].mxu0 %v918_v22  ;;  %472 = vmatmul.mubr.bf16.gmra.mrb[4].mxu1 %v919_v23 }
 0x14f   : > { %v773_v24 = vpop.f32.mrb[0].mxu0  ;;  %v785_v25 = vpop.f32.mrb[0].mxu1 }
 0x150   : > { %v774_v26 = vpop.f32.mrb[1].mxu0  ;;  %v786_v27 = vpop.f32.mrb[1].mxu1 }
 0x151   : > { %v775_v28 = vadd.f32 %v774_v26, %v773_v24  ;;  %v787_v29 = vadd.f32 %v786_v27, %v785_v25  ;;  %v776_v30 = vpop.f32.mrb[2].mxu0  ;;  %v788_v31 = vpop.f32.mrb[2].mxu1 }
 0x152   : > { %v777_v32 = vpop.f32.mrb[3].mxu0  ;;  %v789_v33 = vpop.f32.mrb[3].mxu1 }
 0x153   : > { %v778_v34 = vadd.f32 %v777_v32, %v776_v30  ;;  %v790_v35 = vadd.f32 %v789_v33, %v788_v31  ;;  %v507_v36 = vmul.f32 0.0625, %v775_v28  ;;  %v511_v37 = vmul.f32 0.0625, %v787_v29 }
 0x155   : > { %v508_v38 = vmul.f32 0.0625, %v778_v34  ;;  %v512_v39 = vmul.f32 0.0625, %v790_v35 }
 0x157   : > { %v737_v40 = vpack.c.bf16 %v508_v38, %v507_v36  ;;  %v747_v41 = vpack.c.bf16 %v512_v39, %v511_v37  ;;  %v779_v42 = vpop.f32.mrb[4].mxu0  ;;  %v791_v43 = vpop.f32.mrb[4].mxu1 }
 0x158   : > { %v780_v44 = vpop.f32.mrb[5].mxu0  ;;  %v792_v45 = vpop.f32.mrb[5].mxu1 }
 0x159   : > { %738 = vst [vmem:[%s213_s19] sm:$0xff] %v737_v40   ;;  %755 = vst [vmem:[%s213_s19 + $0x10] sm:$0xff] %v747_v41   ;;  %v781_v46 = vadd.f32 %v780_v44, %v779_v42  ;;  %v793_v47 = vadd.f32 %v792_v45, %v791_v43  ;;  %v782_v48 = vpop.f32.mrb[6].mxu0  ;;  %v794_v49 = vpop.f32.mrb[6].mxu1 }
 0x15a   : > { %v783_v50 = vpop.f32.mrb[7].mxu0  ;;  %v795_v51 = vpop.f32.mrb[7].mxu1 }
 0x15b   : > { %v784_v52 = vadd.f32 %v783_v50, %v782_v48  ;;  %v796_v53 = vadd.f32 %v795_v51, %v794_v49  ;;  %v509_v54 = vmul.f32 0.0625, %v781_v46  ;;  %v513_v55 = vmul.f32 0.0625, %v793_v47 }
 0x15d   : > { %v510_v56 = vmul.f32 0.0625, %v784_v52  ;;  %v514_v57 = vmul.f32 0.0625, %v796_v53 }
 0x15f   : > { %v742_v58 = vpack.c.bf16 %v510_v56, %v509_v54  ;;  %v752_v59 = vpack.c.bf16 %v514_v57, %v513_v55 }
 0x161   : > { %754 = vst [vmem:[%s213_s19 + $0x8] sm:$0xff] %v742_v58   ;;  %756 = vst [vmem:[%s213_s19 + $0x18] sm:$0xff] %v752_v59  }
 0x162   : > { %991 = shalt.err (!%p988_p5)
}
 0x163   : > { %s992_s3 = scalar_lea.hbm %s1271_s7, 512  ;;  %s996_s16 = scalar_lea.hbm %s1322_s2, 1024 }
 0x164   : > { %p993_p9 = scmp.ne.s32.totalorder %s1271_s7, %s992_s3  ;;  %p997_p3 = scmp.lt.u32.totalorder %s1271_s7, %s1322_s2 }
 0x165   : > { %p998_p7 = scmp.lt.u32.totalorder %s996_s16, %s992_s3  ;;  %p1000_p4 = scmp.lt.u32.totalorder %s992_s3, %s1271_s7 }
 0x166   : > { %p994_p1 = pnand %p993_p9, %p1186_p10 }
 0x167   : > { %p999_p13 = por %p998_p7, %p997_p3 }
 0x168   : > { %p995_p2 = pneg %p994_p1 }
 0x169   : > { %p1001_p6 = por %p1000_p4, %p999_p13 }
 0x16b   : > { %p1002_p8 = pnand %p1001_p6, %p995_p2 }
 0x16d   : > { %1005 = shalt.err (!%p1002_p8)
}
 0x16e   : > { %s1073_s17 = smov 64   ;;  %s1074_s19 = smov 4  }
 0x16f   : > { %819 = dma.vmem_to_hbm [thread:$0]  (%p1186_p10), %s1266_s21, 512, %s1271_s7, %s556_s27, %s1073_s17, %s1073_s17, %s1074_s19  }
 0x170 PF: > { %s585_s4 = sand.u32 1, %s1044_s9   ;;  %p1340_p12 = scmp.ne.s32.totalorder %s1330_s20, 0 }
 0x171   : > { %p1341_p11 = scmp.ge.s32.totalorder %s1064_s14, 2  ;;  %s586_s5 = scalar_lea.sflag [#allocation5], %s585_s4 }
 0x173   : > { %p830_p0 = pnand %p1341_p11, %p1340_p12 }
 0x175   : > { %1039 = dma.done.wait (!%p830_p0), %s586_s5, 512  }
 0x176   : > { %1041 = vsyncadd (!%p830_p0), %s586_s5, 4294966784  ;;  %s19_s14 = sadd.s32 1, %s1064_s14   ;;  %s1342_s9 = smov %s1048_s10 }
 0x177   : > { %p16_p5 = scmp.ge.s32.totalorder %s19_s14, 4   ;;  %s1343_s10 = smov %s1052_s11 }
 0x178   : > { %s1344_s11 = smov %s1195_s28  ;;  %s1345_s12 = smov %s1060_s13 }
 0x179   : > { %s1346_s13 = smov %s1348_s25  ;;  %18 = sbr.rel (!%p16_p5) target bundleno = 7 (0x7), region = 86 }
 0x180   :  { %591 = vsyncpa [#allocation4], 1 }
 0x181   :  { %593 = vsyncpa [#allocation4 + $0x1], 1 }
 0x182   :  { %594 = vsyncpa [#allocation7], 1 }
 0x183   :  { %595 = vsyncpa [#allocation5], 1 }
 0x184   :  { %597 = vsyncpa [#allocation5 + $0x1], 1 }

</bundles_post_ra>
